<compile_context>
chip_gen: v7x
topology: tpu7x:2x2x1
jax: 0.10.0
libtpu: 0.0.40
codegen_flags: <defaults>
</compile_context>

<pallas_src>
import jax
import jax.numpy as jnp
from jax.experimental import pallas as pl
from jax.experimental.pallas import tpu as pltpu


def _chip_info():
    """Per-generation tuning knobs.

    Returns (tile_target_bytes, scoped_vmem_default_bytes, n_tensorcores,
    has_bf16_valu).
    """
    try:
        kind = jax.devices()[0].device_kind.lower()
    except Exception:
        kind = ""
    if "v7" in kind:
        # ~3.2 TB/s HBM -> bigger tiles; 2 TCs/chip; 32 MiB scoped VMEM default.
        return 4 << 20, 32 << 20, 2, True
    if "v6" in kind:
        return 4 << 20, 32 << 20, 1, True
    # v5e / unknown: conservative defaults (16 MiB scoped VMEM, no bf16 VALU).
    return 2 << 20, 16 << 20, 1, False


def _drop_path_kernel(scale_ref, x_ref, o_ref):
    # scale_ref: (Bb, 1) -- 0.0 (dropped) or 1/keep_prob (kept), in the
    #            compute dtype (bf16 on v6e/v7x for bf16 x, f32 otherwise).
    # x_ref / o_ref: (Bb, C) tile of the flattened activations.
    x = x_ref[...].astype(scale_ref.dtype)   # no-op on the bf16-native path
    o_ref[...] = (x * scale_ref[...]).astype(o_ref.dtype)


def _pick_blocks(B, F, itemsize, target_bytes, num_tc):
    """Choose a (Bb, C) block: lane-dense 128-multiple C, ~target_bytes tiles.

    The grid uses pl.cdiv, so neither Bb nor C needs to divide the array;
    the trailing partial blocks are masked by Pallas.
    """
    # second-to-last block dim: a multiple of 8, or the full dim for tiny B
    Bb = 8 if B >= 8 else B
    # last block dim: a multiple of 128 (<= array extent), or the full dim
    # when F < 128
    if F < 128:
        C = F
    else:
        lane_cap = max(128, (F // 128) * 128)               # don't exceed F
        max_elems = max(128, target_bytes // (Bb * itemsize))
        C = max(128, min(lane_cap, (max_elems // 128) * 128))
    # pack more batch rows per block when each row slab is small
    # (amortizes the ~0.35 us per-grid-step overhead)
    while Bb * 2 <= B and Bb * 2 * C * itemsize <= target_bytes:
        Bb *= 2
    # on multi-TensorCore chips (v7x) guarantee >= 2 steps along a "parallel"
    # axis so dimension_semantics can shard the work across both TCs
    if num_tc >= 2 and pl.cdiv(B, Bb) == 1 and pl.cdiv(F, C) == 1:
        if F > 128:
            C = max(128, 128 * ((pl.cdiv(F, 128) + 1) // 2))
        elif B >= 16:
            Bb = max(8, 8 * ((pl.cdiv(B, 8) + 1) // 2))
    return Bb, C


def drop_path(x, key, drop_prob: float = 0.0, training: bool = False):
    """Pallas implementation of timm-style drop_path (per-sample stochastic depth)."""
    if drop_prob == 0.0 or not training:
        return x
    if drop_prob >= 1.0:
        raise ValueError("drop_path requires drop_prob < 1.0 (keep_prob > 0).")
    keep_prob = 1.0 - drop_prob

    orig_shape = x.shape
    B = int(orig_shape[0])
    F = 1
    for d in orig_shape[1:]:
        F *= int(d)
    x2 = x.reshape(B, F)

    target_bytes, scoped_default, num_tc, has_bf16_valu = _chip_info()

    # Per-sample Bernoulli(keep_prob) folded into one scale per sample:
    # floor(keep_prob + U) in {0, 1}  (same draw semantics as the torch code).
    u = jax.random.uniform(key, (B,), dtype=jnp.float32)
    scale = jnp.floor(keep_prob + u) * (1.0 / keep_prob)
    # bf16 activations on chips with bf16 VALUs multiply in native dtype
    # (no f32 unpack/pack per vreg); otherwise upcast x to f32 in-kernel.
    scale_dtype = x.dtype if (x.dtype == jnp.bfloat16 and has_bf16_valu) else jnp.float32
    scale = scale.astype(scale_dtype).reshape(B, 1)

    itemsize = x.dtype.itemsize
    Bb, C = _pick_blocks(B, F, itemsize, target_bytes, num_tc)
    grid = (pl.cdiv(B, Bb), pl.cdiv(F, C))

    tile_bytes = Bb * C * itemsize
    params = dict(dimension_semantics=("parallel", "parallel"))
    # double-buffered in + out tiles, tiny scale tiles, plus headroom
    vmem_needed = 4 * tile_bytes + 4 * Bb * scale.dtype.itemsize + (2 << 20)
    if vmem_needed > scoped_default:
        params["vmem_limit_bytes"] = int(vmem_needed)

    out = pl.pallas_call(
        _drop_path_kernel,
        out_shape=jax.ShapeDtypeStruct((B, F), x.dtype),
        grid=grid,
        in_specs=[
            pl.BlockSpec((Bb, 1), lambda i, j: (i, 0)),   # per-sample scale
            pl.BlockSpec((Bb, C), lambda i, j: (i, j)),   # activations tile
        ],
        out_specs=pl.BlockSpec((Bb, C), lambda i, j: (i, j)),
        compiler_params=pltpu.CompilerParams(**params),
        cost_estimate=pl.CostEstimate(
            flops=B * F,
            transcendentals=0,
            bytes_accessed=2 * B * F * itemsize + B * scale.dtype.itemsize,
        ),
    )(scale, x2)
    return out.reshape(orig_shape)


class DropPath:
    """Drop paths (Stochastic Depth) per sample (main path of residual blocks)."""

    def __init__(self, drop_prob=None):
        self.drop_prob = drop_prob if drop_prob is not None else 0.0
        self.training = True

    def __call__(self, x, key):
        return drop_path(x, key, self.drop_prob, self.training)


if __name__ == "__main__":
    key = jax.random.PRNGKey(0)
    kx, kdrop = jax.random.split(key)

    B, N, D = 2, 8, 32
    x = jax.random.normal(kx, (B, N, D), dtype=jnp.float32)

    module = DropPath(drop_prob=0.1)
    out = jax.block_until_ready(module(x, kdrop))
    assert out.shape == x.shape and out.dtype == x.dtype

    # pure-JAX reference (same semantics as the torch code, same uniform draw)
    keep_prob = 1.0 - module.drop_prob
    u = jax.random.uniform(kdrop, (B,), dtype=jnp.float32)
    scale = (jnp.floor(keep_prob + u) * (1.0 / keep_prob)).reshape(B, 1, 1)
    ref = x * scale
    assert jnp.allclose(out, ref, atol=1e-6, rtol=1e-6), "mismatch vs reference"

    # ragged, non-128-aligned trailing shape exercises the masked partial block
    x_r = jax.random.normal(kx, (2, 9, 50), dtype=jnp.float32)   # F = 450
    out_r = jax.block_until_ready(module(x_r, kdrop))
    u_r = jax.random.uniform(kdrop, (2,), dtype=jnp.float32)
    scale_r = (jnp.floor(keep_prob + u_r) * (1.0 / keep_prob)).reshape(2, 1, 1)
    assert jnp.allclose(out_r, x_r * scale_r, atol=1e-6, rtol=1e-6), "ragged mismatch"

    # eval mode / drop_prob == 0 -> identity
    module.training = False
    out_eval = jax.block_until_ready(module(x, kdrop))
    assert jnp.array_equal(out_eval, x)

    print("KERNEL_OK")
</pallas_src>

<mosaic_0001>
module attributes {stable_mosaic.version = 11 : i64} {
  func.func @_drop_path_kernel(%arg0: i32, %arg1: i32, %arg2: memref<2x1xf32, #tpu.memory_space<vmem>>, %arg3: memref<2x256xf32, #tpu.memory_space<vmem>>, %arg4: memref<2x256xf32, #tpu.memory_space<vmem>>) attributes {dimension_semantics = [#tpu.dimension_semantics<parallel>, #tpu.dimension_semantics<parallel>], iteration_bounds = array<i64: 1, 1>, scalar_prefetch = 0 : i64, scratch_operands = 0 : i64, tpu.core_type = #tpu.core_type<tc>, window_params = [{transform_indices = @transform_0, window_bounds = array<i64: 2, 1>}, {transform_indices = @transform_1, window_bounds = array<i64: 2, 256>}, {transform_indices = @transform_2, window_bounds = array<i64: 2, 256>}]} {
    %c0 = arith.constant 0 : index
    %c0_0 = arith.constant 0 : index
    %0 = vector.load %arg3[%c0, %c0_0] : memref<2x256xf32, #tpu.memory_space<vmem>>, vector<2x256xf32>
    %c0_1 = arith.constant 0 : index
    %c0_2 = arith.constant 0 : index
    %1 = vector.load %arg2[%c0_1, %c0_2] : memref<2x1xf32, #tpu.memory_space<vmem>>, vector<2x1xf32>
    %2 = vector.broadcast %1 : vector<2x1xf32> to vector<2x256xf32>
    %3 = arith.mulf %0, %2 : vector<2x256xf32>
    %c0_3 = arith.constant 0 : index
    %c0_4 = arith.constant 0 : index
    %4 = vector.load %arg4[%c0_3, %c0_4] : memref<2x256xf32, #tpu.memory_space<vmem>>, vector<2x256xf32>
    tpu.vector_store %arg4[%c0_3, %c0_4], %3 {strides = array<i32>} : memref<2x256xf32, #tpu.memory_space<vmem>>, vector<2x256xf32>,
    return
  }
  func.func @transform_0(%arg0: i32, %arg1: i32) -> (i32, i32) {
    %c0_i32 = arith.constant 0 : i32
    %c0_i32_0 = arith.constant 0 : i32
    return %arg0, %c0_i32 : i32, i32
  }
  func.func @transform_1(%arg0: i32, %arg1: i32) -> (i32, i32) {
    %c0_i32 = arith.constant 0 : i32
    return %arg0, %arg1 : i32, i32
  }
  func.func @transform_2(%arg0: i32, %arg1: i32) -> (i32, i32) {
    %c0_i32 = arith.constant 0 : i32
    return %arg0, %arg1 : i32, i32
  }
}

</mosaic_0001>

<bundles_post_ra>
// kernel: tpu_custom_call.1
= control target key start
LH: loop header
LB: loop body
LE: loop exit
PB: predicated region body
PF: predicated region fallthrough
CT: control target
= control target key end

     0   :  { %v70_v1 = vmov 0   ;;  %s106_s0 = inlined_call_operand.vmem [shape: f32[2,1], index: 0, kind: input, shape index: {}]   ;;  %s107_s1 = inlined_call_operand.vmem [shape: f32[2,256], index: 1, kind: input, shape index: {}]   ;;  %s108_s2 = inlined_call_operand.hbm [shape: f32[2,256], index: 2, kind: output, shape index: {}]  }
   0x1   :  { %v13_v0 = vld [vmem:[%s106_s0] sm:$0x3]  ;;  %45 = vset.pattern.permute.xlu0 %v70_v1 }
   0x2   :  { %7 = vsyncpa [#allocation3], 0  ;;  %16 = vperm.xlu0 %45, %v13_v0   ;;  %v71_v2 = vmov 269488144   ;;  %v21_v4 = vlaneseq  ;;  %v12_v9 = vld [vmem:[%s107_s1] sm:$0xf] }
   0x3   :  { %v19_v3 = vunpack.c.l.s4 %v71_v2  ;;  %s72_s13 = smov [#allocation2]  }
   0x4   :  { %v22_v6 = vshrl.u32 %v21_v4, 7  ;;  %s34_s14 = sshll.u32 %s72_s13, 4  ;;  %s35_s14 = int_to_ptr.vmem [resolvable:$true] %s34_s14 }
   0x5   :  { %v20_v5 = vunpack.c.0.s8 %v19_v3  ;;  %s46_s0 = scalar_lea.vmem %s35_s14, 64  ;;  %p51_p1 = scmp.lt.s32.totalorder %s35_s14, %s35_s14 }
   0x6   :  { %p47_p0 = scmp.ne.s32.totalorder %s35_s14, %s46_s0  ;;  %p52_p2 = scmp.lt.s32.totalorder %s46_s0, %s46_s0 }
   0x7   :  { %v23_v7 = vsub.s32 %v20_v5, %v22_v6 }
   0x8   :  { %p53_p3 = por %p52_p2, %p51_p1 }
   0xa   :  { %p54_p4 = pnand %p53_p3, %p47_p0 }
  0x81   :  { %v17_v8 = vpop.permute.xlu0 %16 }
  0x82   :  { %v24_v10 = vrot.slane %v17_v8, %v23_v7 }
  0x84   :  { %v26_v11 = vmul.f32 %v24_v10, %v12_v9 }
  0x86   :  { %27 = vst [vmem:[#allocation2] sm:$0xf] %v26_v11 }
  0x87   :  { %57 = shalt.err (!%p54_p4)
}
  0x88   :  { %s58_s17 = scalar_lea.hbm %s108_s2, 64 }
  0x89   :  { %p59_p5 = scmp.ne.s32.totalorder %s108_s2, %s58_s17  ;;  %p62_p6 = scmp.lt.u32.totalorder %s58_s17, %s108_s2 }
  0x8b   :  { %p64_p7 = pnand %p62_p6, %p59_p5 }
  0x8d   :  { %67 = shalt.err (!%p64_p7)
}
  0x8e   :  { %37 = dma.vmem_to_hbm [thread:$0]  %s35_s14, 64, %s108_s2, [#allocation3]  }
  0x8f   :  { %68 = dma.done.wait [#allocation3], 64  }
  0x90   :  { %69 = vsyncadd [#allocation3], 4294967232 }
  0x91   :  { %41 = vsyncpa [#allocation3], 1 }

</bundles_post_ra>
